<compile_context>
chip_gen: v5e
topology: v5e:2x2
jax: 0.10.0
libtpu: 0.0.40
codegen_flags: <defaults>
</compile_context>

<pallas_src>
import jax
import jax.numpy as jnp
from jax.experimental import pallas as pl
from jax.experimental.pallas import tpu as pltpu


def make_gce_kernel(q: float, k: float, tb: int):
    lqk = (1.0 - (k ** q)) / q  # hoisted to a Python constant

    def gce_kernel(nvalid_ref, logits_ref, targets_ref, w_ref, out_ref):
        i = pl.program_id(0)
        n_valid = nvalid_ref[0]                          # true batch size (SMEM)

        x = logits_ref[...]                              # (TB, C) native dtype
        t = targets_ref[...]                             # (TB, 1) int32
        w = w_ref[...].astype(jnp.float32)               # (TB, 1)

        # Row max in the native dtype (exact for max); the f32 upcast is fused
        # into the exp expression, so no named full-tile f32 copy is made.
        m = jnp.max(x, axis=-1, keepdims=True)           # (TB, 1)
        e = jnp.exp((x - m).astype(jnp.float32))         # (TB, C) only big temp
        denom = jnp.sum(e, axis=-1, keepdims=True)       # (TB, 1)

        # Fused target selection on the exp values: softmax numerator for the
        # target class (targets assumed in [0, C); out-of-range silently gives
        # Yg = 0, matching the PyTorch module).
        col = jax.lax.broadcasted_iota(jnp.int32, e.shape, 1)
        yg_num = jnp.sum(jnp.where(col == t, e, 0.0), axis=-1, keepdims=True)

        # Yg = softmax(logits)[target] without a full-width divide; the per-row
        # reciprocal rides the EUP slot.
        yg = yg_num * pl.reciprocal(denom, approx=True)

        lq = (1.0 - jnp.power(yg, q)) / q
        loss = (lq - lqk) * w                            # (TB, 1)

        # Ragged last tile: rows >= n_valid may hold unspecified data (possibly
        # NaN/Inf after exp), so mask with a SELECT, never a multiply.
        row = jax.lax.broadcasted_iota(jnp.int32, (tb, 1), 0) + i * tb
        loss = jnp.where(row < n_valid, loss, 0.0)

        # Per-tile partial sum written to one lane-dense (8, 128) output block
        # (unmasked vst); the tiny cross-tile reduction happens in JAX.
        partial = jnp.sum(loss)
        r = jax.lax.broadcasted_iota(jnp.int32, (8, 128), 0)
        c = jax.lax.broadcasted_iota(jnp.int32, (8, 128), 1)
        out_ref[...] = jnp.where((r == 0) & (c == 0), partial, 0.0)

    return gce_kernel


def _round_up(x: int, m: int) -> int:
    return -(-x // m) * m


def _pick_tb(n_classes: int, in_itemsize: int, batch: int,
             max_block_bytes: int = 8 << 20) -> int:
    """Batch tile sized by the f32 working set, sublane-aligned to the input dtype."""
    sublane = max(8, 32 // max(int(in_itemsize), 1))        # 8 f32 / 16 bf16 / 32 int8
    lane_c = max(_round_up(n_classes, 128), 128)            # VMEM lane padding
    tb = max_block_bytes // (lane_c * 4)                    # 4 B/elem f32 working set
    if batch >= 2 * sublane:                                # >= 2 grid steps (v7x TCs)
        tb = min(tb, _round_up(-(-batch // 2), sublane))
    if batch >= sublane:                                    # keep block within extent
        tb = min(tb, (batch // sublane) * sublane)
    tb = (tb // sublane) * sublane
    return int(max(sublane, tb))


def gce_loss_forward(logits, targets, indexes, weight, q=0.7, k=0.5, tb=None):
    """Pallas implementation of GCELoss.forward.

    logits:  (B, C) float32 or bfloat16 (shipped to the kernel in native dtype)
    targets: (B,)   int
    indexes: (B,)   int
    weight:  (trainset_size, 1) float (non-trainable parameter)
    returns: scalar float32 (mean loss)
    """
    B, C = logits.shape
    itemsize = jnp.dtype(logits.dtype).itemsize
    sublane = max(8, 32 // max(itemsize, 1))

    # Data-dependent gather over the trainset-size weight table stays in JAX.
    w = weight[indexes].astype(jnp.float32).reshape(B, 1)
    t = targets.astype(jnp.int32).reshape(B, 1)

    if tb is None:
        tb = _pick_tb(C, itemsize, B)
    tb = max(sublane, (int(tb) // sublane) * sublane)

    num_tiles = -(-B // tb)       # ragged last tile handled in-kernel, no jnp.pad

    lane_c = max(_round_up(C, 128), 128)
    work_bytes = tb * lane_c * 4          # f32 temps inside the kernel
    in_bytes = tb * lane_c * itemsize     # one input block (native dtype)
    # Double-buffered input + fused f32 temps + headroom; capped below v7x's
    # 64 MiB physical VMEM (larger caps would only help 128 MiB v5e/v6e parts).
    vmem_limit = int(min(max(2 * in_bytes + 4 * work_bytes + (4 << 20), 32 << 20),
                         48 << 20))

    n_valid = jnp.full((1,), B, dtype=jnp.int32)   # SMEM scalar-prefetch operand

    per_tile = pl.pallas_call(
        make_gce_kernel(float(q), float(k), tb),
        out_shape=jax.ShapeDtypeStruct((num_tiles * 8, 128), jnp.float32),
        grid_spec=pltpu.PrefetchScalarGridSpec(
            num_scalar_prefetch=1,
            grid=(num_tiles,),
            in_specs=[
                pl.BlockSpec((tb, C), lambda i, nb: (i, 0)),   # logits (native dtype)
                pl.BlockSpec((tb, 1), lambda i, nb: (i, 0)),   # targets
                pl.BlockSpec((tb, 1), lambda i, nb: (i, 0)),   # gathered weights
            ],
            out_specs=pl.BlockSpec((8, 128), lambda i, nb: (i, 0)),
        ),
        compiler_params=pltpu.CompilerParams(
            dimension_semantics=("parallel",),
            vmem_limit_bytes=vmem_limit,
        ),
    )(n_valid, logits, t, w)

    # Final tiny reduction in JAX; divide by the TRUE batch size.
    return jnp.sum(per_tile) / B


def gce_loss_ref(logits, targets, indexes, weight, q=0.7, k=0.5):
    """Pure-JAX reference mirroring the PyTorch module."""
    p = jax.nn.softmax(logits.astype(jnp.float32), axis=-1)
    Yg = p[jnp.arange(logits.shape[0]), targets][:, None]
    w = weight[indexes].reshape(-1, 1).astype(jnp.float32)
    loss = (1 - Yg ** q) / q * w - (1 - k ** q) / q * w
    return jnp.mean(loss)


if __name__ == "__main__":
    key = jax.random.PRNGKey(0)
    B, C = 20, 16           # TB=8 -> 3 tiles; exercises the ragged-tail masking
    trainset_size = 64

    k1, k2, k3 = jax.random.split(key, 3)
    logits = jax.random.normal(k1, (B, C), dtype=jnp.float32)
    targets = jax.random.randint(k2, (B,), 0, C, dtype=jnp.int32)
    indexes = jax.random.permutation(k3, trainset_size)[:B].astype(jnp.int32)

    # Deterministic parameter init, matching torch.ones(trainset_size, 1).
    weight = jnp.ones((trainset_size, 1), dtype=jnp.float32)

    out = jax.block_until_ready(gce_loss_forward(logits, targets, indexes, weight, tb=8))
    ref = gce_loss_ref(logits, targets, indexes, weight)
    assert jnp.allclose(out, ref, atol=5e-3, rtol=5e-3), (out, ref)

    # Non-trivial weights (as produced by update_weight) exercise the gather path.
    weight2 = weight.at[::2].set(0.0)
    out2 = jax.block_until_ready(gce_loss_forward(logits, targets, indexes, weight2, tb=8))
    ref2 = gce_loss_ref(logits, targets, indexes, weight2)
    assert jnp.allclose(out2, ref2, atol=5e-3, rtol=5e-3), (out2, ref2)

    # Native bf16 logits with auto TB picking (bf16 sublane alignment, >=2 tiles,
    # ragged second tile, upcast fused into the exp pass).
    logits_bf16 = logits.astype(jnp.bfloat16)
    out3 = jax.block_until_ready(gce_loss_forward(logits_bf16, targets, indexes, weight))
    ref3 = gce_loss_ref(logits_bf16.astype(jnp.float32), targets, indexes, weight)
    assert jnp.allclose(out3, ref3, atol=1e-2, rtol=1e-2), (out3, ref3)

    print("KERNEL_OK")
</pallas_src>

<mosaic_0001>
module attributes {stable_mosaic.version = 11 : i64} {
  func.func @gce_kernel(%arg0: i32, %arg1: memref<1xi32, #tpu.memory_space<smem>>, %arg2: memref<8x16xf32, #tpu.memory_space<vmem>>, %arg3: memref<8x1xi32, #tpu.memory_space<vmem>>, %arg4: memref<8x1xf32, #tpu.memory_space<vmem>>, %arg5: memref<8x128xf32, #tpu.memory_space<vmem>>) attributes {dimension_semantics = [#tpu.dimension_semantics<parallel>], iteration_bounds = array<i64: 3>, scalar_prefetch = 1 : i64, scratch_operands = 0 : i64, tpu.core_type = #tpu.core_type<tc>, window_params = [{transform_indices = @transform_0, window_bounds = array<i64: 8, 16>}, {transform_indices = @transform_1, window_bounds = array<i64: 8, 1>}, {transform_indices = @transform_2, window_bounds = array<i64: 8, 1>}, {transform_indices = @transform_3, window_bounds = array<i64: 8, 128>}]} {
    %c0 = arith.constant 0 : index
    %0 = memref.load %arg1[%c0] : memref<1xi32, #tpu.memory_space<smem>>
    %c0_0 = arith.constant 0 : index
    %c0_1 = arith.constant 0 : index
    %1 = vector.load %arg2[%c0_0, %c0_1] : memref<8x16xf32, #tpu.memory_space<vmem>>, vector<8x16xf32>
    %c0_2 = arith.constant 0 : index
    %c0_3 = arith.constant 0 : index
    %2 = vector.load %arg3[%c0_2, %c0_3] : memref<8x1xi32, #tpu.memory_space<vmem>>, vector<8x1xi32>
    %c0_4 = arith.constant 0 : index
    %c0_5 = arith.constant 0 : index
    %3 = vector.load %arg4[%c0_4, %c0_5] : memref<8x1xf32, #tpu.memory_space<vmem>>, vector<8x1xf32>
    %cst = arith.constant dense<0xFF800000> : vector<8xf32>
    %4 = vector.multi_reduction <maximumf>, %1, %cst [1] : vector<8x16xf32> to vector<8xf32>
    %5 = vector.shape_cast %4 : vector<8xf32> to vector<8x1xf32>
    %6 = vector.broadcast %5 : vector<8x1xf32> to vector<8x16xf32>
    %7 = arith.subf %1, %6 : vector<8x16xf32>
    %8 = math.exp %7 : vector<8x16xf32>
    %cst_6 = arith.constant dense<0.000000e+00> : vector<8xf32>
    %9 = vector.multi_reduction <add>, %8, %cst_6 [1] : vector<8x16xf32> to vector<8xf32>
    %10 = vector.shape_cast %9 : vector<8xf32> to vector<8x1xf32>
    %11 = tpu.iota {dimensions = array<i32: 1>} : vector<8x16xi32>
    %12 = vector.broadcast %2 : vector<8x1xi32> to vector<8x16xi32>
    %13 = arith.cmpi eq, %11, %12 : vector<8x16xi32>
    %cst_7 = arith.constant 0.000000e+00 : f32
    %14 = vector.broadcast %cst_7 : f32 to vector<8x16xf32>
    %15 = arith.select %13, %8, %14 : vector<8x16xi1>, vector<8x16xf32>
    %cst_8 = arith.constant dense<0.000000e+00> : vector<8xf32>
    %16 = vector.multi_reduction <add>, %15, %cst_8 [1] : vector<8x16xf32> to vector<8xf32>
    %17 = vector.shape_cast %16 : vector<8xf32> to vector<8x1xf32>
    %18 = tpu.reciprocal %10 {approx = true} : vector<8x1xf32> -> vector<8x1xf32>
    %19 = arith.mulf %17, %18 : vector<8x1xf32>
    %cst_9 = arith.constant 0.699999988 : f32
    %20 = vector.broadcast %cst_9 : f32 to vector<8x1xf32>
    %21 = math.powf %19, %20 : vector<8x1xf32>
    %cst_10 = arith.constant 1.000000e+00 : f32
    %22 = vector.broadcast %cst_10 : f32 to vector<8x1xf32>
    %23 = arith.subf %22, %21 : vector<8x1xf32>
    %cst_11 = arith.constant 0.699999988 : f32
    %24 = vector.broadcast %cst_11 : f32 to vector<8x1xf32>
    %25 = arith.divf %23, %24 : vector<8x1xf32>
    %cst_12 = arith.constant 0.549182534 : f32
    %26 = vector.broadcast %cst_12 : f32 to vector<8x1xf32>
    %27 = arith.subf %25, %26 : vector<8x1xf32>
    %28 = arith.mulf %27, %3 : vector<8x1xf32>
    %29 = tpu.iota {dimensions = array<i32: 0>} : vector<8x1xi32>
    %c8_i32 = arith.constant 8 : i32
    %30 = arith.muli %arg0, %c8_i32 : i32
    %31 = vector.broadcast %30 : i32 to vector<8x1xi32>
    %32 = arith.addi %29, %31 : vector<8x1xi32>
    %33 = vector.broadcast %0 : i32 to vector<8x1xi32>
    %34 = arith.cmpi slt, %32, %33 : vector<8x1xi32>
    %cst_13 = arith.constant 0.000000e+00 : f32
    %35 = vector.broadcast %cst_13 : f32 to vector<8x1xf32>
    %36 = arith.select %34, %28, %35 : vector<8x1xi1>, vector<8x1xf32>
    %37 = vector.shape_cast %36 : vector<8x1xf32> to vector<1x8x1xf32>
    %cst_14 = arith.constant dense<0.000000e+00> : vector<1xf32>
    %38 = vector.multi_reduction <add>, %37, %cst_14 [1, 2] : vector<1x8x1xf32> to vector<1xf32>
    %39 = vector.shape_cast %38 : vector<1xf32> to vector<1x1x1xf32>
    %40 = vector.extract %39[0, 0, 0] : f32 from vector<1x1x1xf32>
    %41 = tpu.iota {dimensions = array<i32: 0>} : vector<8x128xi32>
    %42 = tpu.iota {dimensions = array<i32: 1>} : vector<8x128xi32>
    %c0_i32 = arith.constant 0 : i32
    %43 = vector.broadcast %c0_i32 : i32 to vector<8x128xi32>
    %44 = arith.cmpi eq, %41, %43 : vector<8x128xi32>
    %c0_i32_15 = arith.constant 0 : i32
    %45 = vector.broadcast %c0_i32_15 : i32 to vector<8x128xi32>
    %46 = arith.cmpi eq, %42, %45 : vector<8x128xi32>
    %47 = arith.andi %44, %46 : vector<8x128xi1>
    %cst_16 = arith.constant 0.000000e+00 : f32
    %48 = vector.broadcast %40 : f32 to vector<8x128xf32>
    %49 = vector.broadcast %cst_16 : f32 to vector<8x128xf32>
    %50 = arith.select %47, %48, %49 : vector<8x128xi1>, vector<8x128xf32>
    %c0_17 = arith.constant 0 : index
    %c0_18 = arith.constant 0 : index
    %51 = vector.load %arg5[%c0_17, %c0_18] : memref<8x128xf32, #tpu.memory_space<vmem>>, vector<8x128xf32>
    tpu.vector_store %arg5[%c0_17, %c0_18], %50 {strides = array<i32>} : memref<8x128xf32, #tpu.memory_space<vmem>>, vector<8x128xf32>,
    return
  }
  func.func @transform_0(%arg0: i32, %arg1: memref<1xi32, #tpu.memory_space<smem>>) -> (i32, i32) {
    %c0_i32 = arith.constant 0 : i32
    %c0_i32_0 = arith.constant 0 : i32
    return %arg0, %c0_i32 : i32, i32
  }
  func.func @transform_1(%arg0: i32, %arg1: memref<1xi32, #tpu.memory_space<smem>>) -> (i32, i32) {
    %c0_i32 = arith.constant 0 : i32
    %c0_i32_0 = arith.constant 0 : i32
    return %arg0, %c0_i32 : i32, i32
  }
  func.func @transform_2(%arg0: i32, %arg1: memref<1xi32, #tpu.memory_space<smem>>) -> (i32, i32) {
    %c0_i32 = arith.constant 0 : i32
    %c0_i32_0 = arith.constant 0 : i32
    return %arg0, %c0_i32 : i32, i32
  }
  func.func @transform_3(%arg0: i32, %arg1: memref<1xi32, #tpu.memory_space<smem>>) -> (i32, i32) {
    %c0_i32 = arith.constant 0 : i32
    %c0_i32_0 = arith.constant 0 : i32
    return %arg0, %c0_i32 : i32, i32
  }
}

</mosaic_0001>

<bundles_post_ra>
// kernel: tpu_custom_call.1
= control target key start
LH: loop header
LB: loop body
LE: loop exit
PB: predicated region body
PF: predicated region fallthrough
CT: control target
= control target key end

     0   :  { %s714_s0 = inlined_call_operand.<no memory space> [shape: s32[1], index: 0, kind: input, shape index: {}]   ;;  %s715_s1 = inlined_call_operand.vmem [shape: f32[20,16], index: 1, kind: input, shape index: {}]   ;;  %s716_s2 = inlined_call_operand.vmem [shape: s32[20,1], index: 2, kind: input, shape index: {}]   ;;  %s717_s3 = inlined_call_operand.vmem [shape: f32[20,1], index: 3, kind: input, shape index: {}]   ;;  %s718_s4 = inlined_call_operand.hbm [shape: f32[24,128], index: 4, kind: output, shape index: {}]  }
   0x1   :  { %9 = sst [smem:[#allocation3]] %s714_s0 }
   0x2   :  { %10 = vsyncpa [#allocation5], 0 }
   0x3   :  { %12 = vsyncpa [#allocation5 + $0x1], 0  ;;  %s595_s17 = smov 0   ;;  %s597_s18 = smov 0  }
   0x4   :  { %s599_s19 = smov 0   ;;  %s601_s20 = smov 0  }
   0x5 LB: > { %s616_s0 = sadd.s32 4294967295, %s563_s20   ;;  %s364_s21 = sadd.s32 4294967294, %s563_s20   ;;  %s563_s20 = sphi %s601_s20, %s724_s20   ;;  %s559_s19 = sphi %s599_s19, %s723_s19   ;;  %s555_s18 = sphi %s597_s18, %s722_s18   ;;  %s551_s17 = sphi %s595_s17, %s721_s17  }
   0x6   : > { %s620_s22 = sadd.s32 1, %s563_s20   ;;  %s103_s23 = sadd.s32 1, %s559_s19 }
   0x7   : > { %s100_s24 = ssub.s32 %s563_s20, %s620_s22  ;;  %p113_p0 = scmp.ne.s32.totalorder %s559_s19, %s555_s18 }
   0x8   : > { %p101_p1 = scmp.eq.s32.totalorder %s100_s24, 0  ;;  %p114_p2 = scmp.eq.s32.totalorder %s616_s0, 2 }
   0x9   : > { %p119_p3 = scmp.ne.s32.totalorder %s555_s18, %s551_s17  ;;  %p120_p4 = scmp.eq.s32.totalorder %s364_s21, 2 }
   0xa   : > { %s631_s25 = scalar_select %p101_p1, %s559_s19, %s103_s23  }
   0xb   : > { %p633_p5 = por %p114_p2, %p113_p0  ;;  %p637_p6 = por %p120_p4, %p119_p3 }
   0xc   : > { %p367_p7 = scmp.ge.s32.totalorder %s563_s20, 1  ;;  %p159_p8 = scmp.lt.s32.totalorder %s563_s20, 4 }
   0xe   : > { %p160_p9 = pnand %p367_p7, %p159_p8 }
   0xf   : > { %p190_p10 = scmp.lt.s32.totalorder (!%p160_p9), %s616_s0, 2  ;;  %s202_s10 = sld [smem:[#allocation3]] (!%p160_p9) }
  0x10   : > { %163 = sbr.rel (%p160_p9) target bundleno = 533 (0x215), region = 32  ;;  %s373_s11 = sshll.u32 (!%p160_p9), %s616_s0, 3 }
  0x11   : > { %s187_s15 = sand.u32 (!%p160_p9), 1, %s555_s18   ;;  %s276_s24 = scalar_lea.hbm (!%p160_p9), %s718_s4, %s373_s11 }
  0x12   : > { %s368_s16 = sshll.u32 (!%p160_p9), %s187_s15, 3  ;;  %s280_s30 = sshll.u32 (!%p160_p9), %s276_s24, 4  ;;  %s281_s30 = int_to_ptr.hbm [resolvable:$true] %s280_s30 }
  0x15   : > { %v565_v0 = vmov 0   ;;  %s191_s28 = scalar_select %p190_p10, %s616_s0, 2  ;;  %vm206_vm0 = vcmask 130048   ;;  %v216_v9 = vlaneseq  ;;  %v566_v46 = vmov 0.7  }
  0x16   : > { %492 = vset.pattern.permute.xlu0 %v565_v0  ;;  %vm248_vm14 = vcmask 7168   ;;  %s515_s0 = sshra.s32 %s281_s30, 4  ;;  %s516_s0 = int_to_ptr.hbm [resolvable:$true] %s515_s0 }
  0x17   : > { %s645_s29 = sshll.u32 %s191_s28, 3  ;;  %v658_v10 = vand.u32 127, %v216_v9  ;;  %s189_s28 = scalar_lea.vmem [#allocation4], %s368_s16 }
  0x18   : > { %s193_s6 = scalar_lea.vmem %s715_s1, %s645_s29  ;;  %s197_s9 = scalar_lea.vmem %s716_s2, %s645_s29 }
  0x19   : > { %v203_v1 = vld [vmem:[%s193_s6] sm:$0xff]  ;;  %s201_s14 = scalar_lea.vmem %s717_s3, %s645_s29  ;;  %s278_s29 = sshll.u32 %s189_s28, 4  ;;  %s279_s29 = int_to_ptr.vmem [resolvable:$true] %s278_s29 }
  0x1a   : > { %v207_v2 = vsel %vm206_vm0, %v203_v1, -inf  ;;  %v204_v3 = vld [vmem:[%s197_s9] sm:$0xff]  ;;  %s266_s6 = scalar_lea.sflag [#allocation5], %s187_s15  ;;  %s517_s7 = scalar_lea.hbm %s516_s0, 8 }
  0x1b   : > { %208 = vmax.xlane.f32.xlu0 %v207_v2  ;;  %v241_v2 = vshrl.u32 %v216_v9, 7  ;;  %p518_p11 = scmp.ne.s32.totalorder %s516_s0, %s517_s7  ;;  %p522_p0 = scmp.lt.s32.totalorder %s516_s0, %s718_s4 }
  0x1d   : > { %vm259_vm15 = vcmp.eq.s32.totalorder %v241_v2, 0  ;;  %p519_p12 = pnand %p518_p11, %p633_p5 }
  0x1f   : > { %p520_p13 = pneg %p519_p12 }
  0x2f   : > { %219 = vperm.xlu0 %492, %v204_v3  }
  0x8e   : > { %v209_v4 = vpop.xlane.xlu0 %208 }
  0x8f   : > { %v210_v5 = vsub.f32 %v203_v1, %v209_v4  ;;  %v243_v4 = vstv %s373_s11 }
  0x91   : > { %v211_v6 = vmul.f32 1.442695, %v210_v5 }
  0x93   : > { %493 = vpow2.f32 %v211_v6 }
  0x99   : > { %v494_v7 = vpop.eup %493 }
  0x9a   : > { %v213_v8 = vsel %vm206_vm0, %v494_v7, 0.0 }
  0x9b   : > { %214 = vadd.xlane.f32.xlu1 %v213_v8  ;;  %v244_v8 = vadd.s32 %v243_v4, %v241_v2 }
  0xa1   : > { %v220_v11 = vpop.permute.xlu0 %219 }
  0xa2   : > { %vm221_vm1 = vcmp.eq.s32.totalorder %v658_v10, %v220_v11 }
  0xa3   : > { %v222_v12 = vsel %vm221_vm1, %v494_v7, 0.0 }
  0xa4   : > { %v223_v13 = vsel %vm206_vm0, %v222_v12, 0.0  ;;  %v245_v12 = vstv %s202_s10  ;;  %vm260_vm0 = vcmp.eq.s32.totalorder %v658_v10, 0  ;;  %s521_s10 = scalar_lea.hbm %s718_s4, 24 }
  0xa5   : > { %224 = vadd.xlane.f32.xlu1 %v223_v13  ;;  %v205_v13 = vld [vmem:[%s201_s14] sm:$0xff]  ;;  %vm246_vm13 = vcmp.lt.s32.totalorder %v244_v8, %v245_v12  ;;  %vm261_vm1 = vmand %vm259_vm15, %vm260_vm0  ;;  %p523_p1 = scmp.lt.s32.totalorder %s521_s10, %s517_s7 }
  0xa7   : > { %p524_p2 = por %p523_p1, %p522_p0 }
  0xa9   : > { %p525_p3 = pnand %p524_p2, %p520_p13 }
 0x10e   : > { %v215_v14 = vpop.xlane.xlu1 %214 }
 0x10f   : > { %495 = vrcp.f32 %v215_v14 }
 0x110   : > { %497 = vrcp.f32 %v566_v46 }
 0x115   : > { %v496_v15 = vpop.eup %495 }
 0x116   : > { %v498_v51 = vpop.eup %497 }
 0x117   : > { %v231_v55 = vmul.f32 0.7, %v498_v51  ;;  %vm235_vm10 = vweird.f32 %v498_v51 }
 0x118   : > { %v225_v16 = vpop.xlane.xlu1 %224 }
 0x119   : > { %v662_v17 = vmul.f32 %v496_v15, %v225_v16  ;;  %v232_v59 = vsub.f32 1.0, %v231_v55 }
 0x11b   : > { %v382_v18 = vand.u32 2147483647, %v662_v17  ;;  %v233_v60 = vmul.f32 %v498_v51, %v232_v59  ;;  %vm429_vm7 = vcmp.lt.f32.partialorder %v662_v17, 0  ;;  %vm430_vm8 = vcmp.eq.f32.partialorder %v662_v17, 0 }
 0x11c   : > { %vm442_vm11 = vcmp.ne.f32.partialorder %v662_v17, %v662_v17  ;;  %vm431_vm12 = vcmp.eq.f32.partialorder %v662_v17, 1065353216 }
 0x11d   : > { %v388_v19 = vand.u32 8388607, %v382_v18  ;;  %v384_v27 = vand.u32 2139095040, %v382_v18  ;;  %vm422_vm3 = vweird.f32 %v382_v18  ;;  %vm421_vm4 = vcmp.lt.f32.partialorder %v382_v18, 0.0 }
 0x11e   : > { %vm420_vm5 = vcmp.eq.f32.partialorder %v382_v18, 0.0  ;;  %vm419_vm6 = vcmp.eq.f32.partialorder %v382_v18, 1.0  ;;  %v234_v63 = vadd.f32 %v498_v51, %v233_v60  ;;  %vm434_vm9 = vcmp.eq.f32.partialorder %v382_v18, 2139095040 }
 0x11f   : > { %v389_v20 = vor.u32 8388608, %v388_v19  ;;  %v385_v32 = vshrl.u32 %v384_v27, 23 }
 0x120   : > { %v236_v6 = vsel %vm235_vm10, %v498_v51, %v234_v63 }
 0x121   : > { %v391_v21 = vand.u32 8388607, %v389_v20  ;;  %v447_v37 = vadd.s32 4294967169, %v385_v32 }
 0x123   : > { %v392_v22 = vor.u32 1065353216, %v391_v21  ;;  %v396_v42 = vadd.s32 1, %v447_v37 }
 0x125   : > { %vm393_vm2 = vcmp.ge.f32.partialorder %v392_v22, 1.4142135  ;;  %v394_v23 = vmul.f32 0.5, %v392_v22 }
 0x126   : > { %v397_v47 = vsel %vm393_vm2, %v396_v42, %v447_v37 }
 0x127   : > { %v395_v24 = vsel %vm393_vm2, %v394_v23, %v392_v22  ;;  %v417_v50 = vcvt.s32.f32 %v397_v47 }
 0x128   : > { %v448_v25 = vadd.f32 -1.0, %v395_v24 }
 0x12a   : > { %v399_v26 = vmul.f32 %v448_v25, %v448_v25 }
 0x12c   : > { %v400_v28 = vmul.f32 0.12621109, %v399_v26  ;;  %v402_v29 = vmul.f32 -0.20706727, %v399_v26 }
 0x12e   : > { %v401_v30 = vadd.f32 0.21545328, %v400_v28  ;;  %v403_v31 = vadd.f32 -0.23896284, %v402_v29 }
 0x130   : > { %v404_v33 = vmul.f32 %v401_v30, %v399_v26  ;;  %v406_v34 = vmul.f32 %v403_v31, %v399_v26 }
 0x132   : > { %v405_v35 = vadd.f32 0.28795174, %v404_v33  ;;  %v407_v36 = vadd.f32 -0.3607037, %v406_v34 }
 0x134   : > { %v408_v38 = vmul.f32 %v405_v35, %v399_v26  ;;  %v410_v39 = vmul.f32 %v407_v36, %v399_v26 }
 0x136   : > { %v409_v40 = vadd.f32 0.48090908, %v408_v38  ;;  %v411_v41 = vadd.f32 -0.72134733, %v410_v39 }
 0x138   : > { %v412_v43 = vmul.f32 %v409_v40, %v399_v26  ;;  %v414_v45 = vmul.f32 %v448_v25, %v411_v41 }
 0x13a   : > { %v413_v44 = vadd.f32 1.442695, %v412_v43 }
 0x13c   : > { %v415_v48 = vadd.f32 %v414_v45, %v413_v44 }
 0x13e   : > { %v416_v49 = vmul.f32 %v448_v25, %v415_v48 }
 0x140   : > { %v418_v52 = vadd.f32 %v417_v50, %v416_v49 }
 0x142   : > { %v423_v53 = vsel %vm422_vm3, %v382_v18, %v418_v52 }
 0x143   : > { %v424_v54 = vsel %vm421_vm4, nan, %v423_v53 }
 0x144   : > { %v425_v56 = vsel %vm420_vm5, -inf, %v424_v54 }
 0x145   : > { %v426_v57 = vsel %vm419_vm6, 0.0, %v425_v56 }
 0x146   : > { %v427_v58 = vmul.f32 0.7, %v426_v57 }
 0x148   : > { %499 = vpow2.f32 %v427_v58 }
 0x14e   : > { %v500_v61 = vpop.eup %499 }
 0x14f   : > { %v435_v62 = vsel %vm429_vm7, 2143289344, %v500_v61 }
 0x150   : > { %v436_v0 = vsel %vm430_vm8, 0, %v435_v62 }
 0x151   : > { %v441_v1 = vsel %vm434_vm9, 2139095040, %v436_v0 }
 0x152   : > { %v445_v3 = vsel %vm442_vm11, 2143289344, %v441_v1 }
 0x153   : > { %v446_v5 = vsel %vm431_vm12, 1065353216, %v445_v3 }
 0x154   : > { %v229_v7 = vsub.f32 1.0, %v446_v5 }
 0x156   : > { %v237_v11 = vmul.f32 %v236_v6, %v229_v7 }
 0x158   : > { %v372_v14 = vadd.f32 -0.54918253, %v237_v11 }
 0x15a   : > { %v239_v9 = vmul.f32 %v372_v14, %v205_v13 }
 0x15c   : > { %v247_v15 = vsel %vm246_vm13, %v239_v9, 0.0 }
 0x15d   : > { %v249_v16 = vsel %vm248_vm14, %v247_v15, 0.0 }
 0x15e   : > { %250 = vadd.xlane.f32.xlu2 %v249_v16 }
 0x1d1   : > { %v251_v17 = vpop.xlane.xlu2 %250 }
 0x1d2   : > { %v252_v18 = vrot.slane %v251_v17, 4 }
 0x1d4   : > { %v253_v19 = vadd.f32 %v252_v18, %v251_v17 }
 0x1d6   : > { %v254_v20 = vrot.slane %v253_v19, 2 }
 0x1d8   : > { %v255_v21 = vadd.f32 %v254_v20, %v253_v19 }
 0x1da   : > { %v256_v22 = vrot.slane %v255_v21, 1 }
 0x1dc   : > { %v257_v23 = vadd.f32 %v256_v22, %v255_v21 }
 0x1de   : > { %449 = vpush %v257_v23 }
 0x20f   : > { %s450_s5 = spop %449 }
 0x210   : > { %v262_v24 = vstv %s450_s5 }
 0x211   : > { %v263_v25 = vsel %vm261_vm1, %v262_v24, 0.0 }
 0x212   : > { %264 = vst [vmem:[%s189_s28] sm:$0xff] %v263_v25 }
 0x213   : > { %528 = shalt.err (!%p525_p3)
}
 0x214   : > { %451 = dma.vmem_to_hbm [thread:$0]  (%p633_p5), %s279_s29, 128, %s281_s30, %s266_s6  }
 0x215 PF: > { %p457_p4 = scmp.ge.s32.totalorder %s563_s20, 2  ;;  %s292_s13 = sand.u32 1, %s551_s17  }
 0x216   : > { %s293_s14 = scalar_lea.sflag [#allocation5], %s292_s13 }
 0x217   : > { %p454_p7 = pnand %p457_p4, %p637_p6 }
 0x219   : > { %p455_p8 = pneg %p454_p7 }
 0x21b   : > { %546 = dma.done.wait (%p455_p8), %s293_s14, 128  }
 0x21c   : > { %548 = vsyncadd (%p455_p8), %s293_s14, 4294967168  ;;  %p15_p9 = scmp.ge.s32.totalorder %s620_s22, 5   ;;  %s721_s17 = smov %s555_s18 }
 0x21d   : > { %s722_s18 = smov %s559_s19  ;;  %s723_s19 = smov %s631_s25 }
 0x21e   : > { %s724_s20 = smov %s620_s22  ;;  %17 = sbr.rel (!%p15_p9) target bundleno = 5 (0x5), region = 73 }
 0x223   :  { %299 = vsyncpa [#allocation5], 1 }
 0x224   :  { %301 = vsyncpa [#allocation5 + $0x1], 1 }

</bundles_post_ra>
